<compile_context>
chip_gen: v6e
topology: v6e:2x2x1
jax: 0.10.0
libtpu: 0.0.40
codegen_flags: <defaults>
</compile_context>

<pallas_src>
import functools

import jax
import jax.numpy as jnp
from jax.experimental import pallas as pl
from jax.experimental.pallas import tpu as pltpu


def _layernorm_kernel(*refs, eps, n_features, pack_k, use_scale, use_center):
    idx = 0
    x_ref = refs[idx]; idx += 1
    scale_ref = None
    center_ref = None
    if use_scale:
        scale_ref = refs[idx]; idx += 1
    if use_center:
        center_ref = refs[idx]; idx += 1
    o_ref = refs[idx]

    x = x_ref[...].astype(jnp.float32)
    f = n_features
    # torch.std default: unbiased (ddof=1).  f == 1 -> NaN, same as torch.
    inv_nm1 = jnp.float32(1.0 / (f - 1)) if f > 1 else jnp.float32(float("nan"))
    eps_f = jnp.float32(eps)

    def _normalize(seg):
        mean = jnp.mean(seg, axis=-1, keepdims=True)
        diff = seg - mean
        var = jnp.sum(diff * diff, axis=-1, keepdims=True) * inv_nm1
        std = jnp.sqrt(var)
        # One reciprocal per row (EUP slot, off the VALU); exact (approx=False).
        inv = pl.reciprocal(std + eps_f, approx=False)
        return diff * inv

    if pack_k == 1:
        out = _normalize(x)
    else:
        # Lane-packed layout: each 128-lane row holds pack_k original rows of
        # n_features lanes each.  Normalize each segment independently (static
        # lane slices), then concatenate back to a lane-dense (tile_r, 128) tile.
        segs = [_normalize(x[:, j * f:(j + 1) * f]) for j in range(pack_k)]
        out = jnp.concatenate(segs, axis=-1)

    if use_scale:
        out = out * scale_ref[...].astype(jnp.float32)
    if use_center:
        out = out + center_ref[...].astype(jnp.float32)
    o_ref[...] = out.astype(o_ref.dtype)


def _vmem_plan():
    """Return (block_budget_bytes, vmem_limit_bytes), generation aware."""
    try:
        vmem = int(pltpu.get_tpu_info().vmem_capacity_bytes)
    except Exception:
        vmem = 128 * 1024 * 1024
    if vmem <= 64 * 1024 * 1024:
        # v7x-class (64 MiB VMEM, 3.2 TB/s HBM): per-byte DMA is ~2.4x faster than
        # v6e while per-step overhead is unchanged, so take a larger *fraction* of
        # the smaller VMEM for the pipelined blocks.
        budget = vmem // 3                                  # ~21 MiB of blocks
        limit = min(48 * 1024 * 1024, (3 * vmem) // 4)      # keep < ~75% physical
    else:
        # v5e / v6e (128 MiB VMEM): raise the old 24 MiB cap for wide-feature rows.
        budget = min(vmem // 3, 44 * 1024 * 1024)
        limit = min(80 * 1024 * 1024, (5 * vmem) // 8)
    return int(budget), int(limit)


def _align_up(n, m):
    return ((n + m - 1) // m) * m


def _pick_tile_rows(rows, lane_width, dtype, budget_bytes):
    itemsize = jnp.dtype(dtype).itemsize
    # Per-row pipelined footprint: double-buffered input + double-buffered output
    # blocks in x.dtype plus ~one f32 intermediate.  (Calibrated down from the old
    # 2x-pessimistic model: the f32 cast of an f32 input is a no-op and most temps
    # live in vregs.)
    bytes_per_row = lane_width * (4 * itemsize + 4)
    tile = max(int(budget_bytes // max(bytes_per_row, 1)), 1)
    # Sublane alignment (sub-32-bit dtypes pack along sublanes).
    align = 8 if itemsize >= 4 else (16 if itemsize == 2 else 32)
    # Keep >= ~4 grid steps when rows permit: one step means no DMA/compute overlap
    # and, on v7x, only one of the two TensorCores gets work.
    min_steps = 4
    if rows >= min_steps * align:
        tile = min(tile, _align_up(pl.cdiv(rows, min_steps), align))
    if tile >= rows:
        return rows  # single full-extent block along rows is always legal
    return max(align, (tile // align) * align)


def layer_norm(x, scale_param=None, center_param=None, *,
               eps=1e-6, center=True, scale=False, tile_rows=None):
    """x: (rows, features); scale_param/center_param: (features,) arrays (or None).

    tile_rows (optional) is specified in *packed* rows when the lane-packing path
    is active (features < 128 and 128 % features == 0 and rows % (128//features) == 0).
    """
    rows, features = x.shape
    budget, vmem_limit = _vmem_plan()

    # --- Lane packing: make narrow-feature rows lane-dense (128 lanes) -------
    pack_k = 1
    if 8 <= features < 128 and 128 % features == 0:
        k = 128 // features
        if rows % k == 0 and rows >= k:
            pack_k = k
    lane_width = features * pack_k
    p_rows = rows // pack_k

    itemsize = jnp.dtype(x.dtype).itemsize
    align = 8 if itemsize >= 4 else (16 if itemsize == 2 else 32)
    bytes_per_row = lane_width * (4 * itemsize + 4)
    if min(align, p_rows) * bytes_per_row > (9 * vmem_limit) // 10:
        # TODO(synk): very wide feature dims need a feature-axis ("arbitrary") grid
        # with sum / sum-of-squares accumulators and a second normalize pass; fall
        # back to plain XLA here instead of risking a VMEM OOM (matters most on
        # v7x's 64 MiB VMEM).
        return layer_norm_ref(x, scale_param, center_param, eps=eps,
                              center=center, scale=scale).astype(x.dtype)

    x_in = x.reshape(p_rows, lane_width) if pack_k > 1 else x

    tile_r = tile_rows if tile_rows is not None else _pick_tile_rows(
        p_rows, lane_width, x.dtype, budget)
    tile_r = int(min(tile_r, p_rows))
    grid = (pl.cdiv(p_rows, tile_r),)

    in_specs = [pl.BlockSpec((tile_r, lane_width), lambda i: (i, 0))]
    args = [x_in]
    if scale:
        sp = scale_param if pack_k == 1 else jnp.tile(scale_param, pack_k)
        in_specs.append(pl.BlockSpec((1, lane_width), lambda i: (0, 0)))
        args.append(sp.reshape(1, lane_width))
    if center:
        cp = center_param if pack_k == 1 else jnp.tile(center_param, pack_k)
        in_specs.append(pl.BlockSpec((1, lane_width), lambda i: (0, 0)))
        args.append(cp.reshape(1, lane_width))

    kernel = functools.partial(
        _layernorm_kernel,
        eps=eps,
        n_features=features,
        pack_k=pack_k,
        use_scale=scale,
        use_center=center,
    )

    out = pl.pallas_call(
        kernel,
        out_shape=jax.ShapeDtypeStruct((p_rows, lane_width), x.dtype),
        grid_spec=pltpu.PrefetchScalarGridSpec(
            num_scalar_prefetch=0,
            grid=grid,
            in_specs=in_specs,
            out_specs=pl.BlockSpec((tile_r, lane_width), lambda i: (i, 0)),
        ),
        compiler_params=pltpu.CompilerParams(
            dimension_semantics=("parallel",),   # rows independent -> megacore
            vmem_limit_bytes=int(vmem_limit),
        ),
    )(*args)

    return out.reshape(rows, features) if pack_k > 1 else out


def layer_norm_ref(x, scale_param=None, center_param=None, *,
                   eps=1e-6, center=True, scale=False):
    """Pure-JAX reference matching the PyTorch forward exactly."""
    x = x.astype(jnp.float32)
    mean = jnp.mean(x, axis=-1, keepdims=True)
    std = jnp.sqrt(jnp.sum((x - mean) ** 2, axis=-1, keepdims=True)
                   / (x.shape[-1] - 1))
    out = (x - mean) / (std + eps)
    if scale:
        out = out * scale_param
    if center:
        out = out + center_param
    return out


if __name__ == "__main__":
    key = jax.random.PRNGKey(0)

    # --- Case 1: module-default small shape; features=32 < 128 exercises the
    #             lane-packing path (k=4, packed rows = 2, single block) ---------
    batch, features = 8, 32
    x = jax.random.normal(key, (batch, features), dtype=jnp.float32)
    # Parameter init matching nn.Module __init__: scale=ones (unused, scale=False),
    # center=zeros.
    scale_param = jnp.ones((features,), dtype=jnp.float32)
    center_param = jnp.zeros((features,), dtype=jnp.float32)

    out = layer_norm(x, scale_param, center_param,
                     eps=1e-6, center=True, scale=False)
    out = jax.block_until_ready(out)
    ref = layer_norm_ref(x, scale_param, center_param,
                         eps=1e-6, center=True, scale=False)
    assert out.shape == (batch, features)
    assert jnp.allclose(out, ref, atol=1e-5, rtol=1e-5), "mismatch vs reference (case 1)"

    # --- Case 2: lane-dense features (no packing), forced multi-step grid with a
    #             partial last block, scale=True path --------------------------
    rows2, feat2 = 300, 256
    x2 = jax.random.normal(jax.random.PRNGKey(0), (rows2, feat2), dtype=jnp.float32)
    scale2 = 1.0 + 0.01 * jax.random.normal(jax.random.PRNGKey(1), (feat2,),
                                            dtype=jnp.float32)
    center2 = 0.1 * jax.random.normal(jax.random.PRNGKey(2), (feat2,),
                                      dtype=jnp.float32)
    out2 = layer_norm(x2, scale2, center2, eps=1e-6, center=True, scale=True,
                      tile_rows=128)  # force 3 grid steps (128, 128, 44)
    out2 = jax.block_until_ready(out2)
    ref2 = layer_norm_ref(x2, scale2, center2, eps=1e-6, center=True, scale=True)
    assert out2.shape == (rows2, feat2)
    assert jnp.allclose(out2, ref2, atol=1e-5, rtol=1e-5), "mismatch vs reference (case 2)"

    # --- Case 3: lane-packed path with an auto-tiled multi-step grid and a
    #             partial last packed block, scale=True path --------------------
    rows3, feat3 = 300, 32            # pack_k = 4 -> 75 packed rows of 128 lanes
    x3 = jax.random.normal(jax.random.PRNGKey(3), (rows3, feat3), dtype=jnp.float32)
    scale3 = 1.0 + 0.01 * jax.random.normal(jax.random.PRNGKey(4), (feat3,),
                                            dtype=jnp.float32)
    center3 = 0.1 * jax.random.normal(jax.random.PRNGKey(5), (feat3,),
                                      dtype=jnp.float32)
    out3 = layer_norm(x3, scale3, center3, eps=1e-6, center=True, scale=True)
    out3 = jax.block_until_ready(out3)
    ref3 = layer_norm_ref(x3, scale3, center3, eps=1e-6, center=True, scale=True)
    assert out3.shape == (rows3, feat3)
    assert jnp.allclose(out3, ref3, atol=1e-5, rtol=1e-5), "mismatch vs reference (case 3)"

    print("KERNEL_OK")
</pallas_src>

<mosaic_0001>
module attributes {stable_mosaic.version = 11 : i64} {
  func.func @_layernorm_kernel(%arg0: i32, %arg1: memref<2x128xf32, #tpu.memory_space<vmem>>, %arg2: memref<1x128xf32, #tpu.memory_space<vmem>>, %arg3: memref<2x128xf32, #tpu.memory_space<vmem>>) attributes {dimension_semantics = [#tpu.dimension_semantics<parallel>], iteration_bounds = array<i64: 1>, scalar_prefetch = 0 : i64, scratch_operands = 0 : i64, tpu.core_type = #tpu.core_type<tc>, window_params = [{transform_indices = @transform_0, window_bounds = array<i64: 2, 128>}, {pipeline_mode = #tpu.pipeline_mode<synchronous>, transform_indices = @transform_1, window_bounds = array<i64: 1, 128>}, {transform_indices = @transform_2, window_bounds = array<i64: 2, 128>}]} {
    %c0 = arith.constant 0 : index
    %c0_0 = arith.constant 0 : index
    %0 = vector.load %arg1[%c0, %c0_0] : memref<2x128xf32, #tpu.memory_space<vmem>>, vector<2x128xf32>
    %1 = vector.extract_strided_slice %0 {offsets = [0, 0], sizes = [2, 32], strides = [1, 1]} : vector<2x128xf32> to vector<2x32xf32>
    %cst = arith.constant dense<0.000000e+00> : vector<2xf32>
    %2 = vector.multi_reduction <add>, %1, %cst [1] : vector<2x32xf32> to vector<2xf32>
    %3 = vector.shape_cast %2 : vector<2xf32> to vector<2x1xf32>
    %cst_1 = arith.constant 3.200000e+01 : f32
    %4 = vector.broadcast %cst_1 : f32 to vector<2x1xf32>
    %5 = arith.divf %3, %4 : vector<2x1xf32>
    %6 = vector.broadcast %5 : vector<2x1xf32> to vector<2x32xf32>
    %7 = arith.subf %1, %6 : vector<2x32xf32>
    %8 = arith.mulf %7, %7 : vector<2x32xf32>
    %cst_2 = arith.constant dense<0.000000e+00> : vector<2xf32>
    %9 = vector.multi_reduction <add>, %8, %cst_2 [1] : vector<2x32xf32> to vector<2xf32>
    %10 = vector.shape_cast %9 : vector<2xf32> to vector<2x1xf32>
    %cst_3 = arith.constant 0.0322580636 : f32
    %11 = vector.broadcast %cst_3 : f32 to vector<2x1xf32>
    %12 = arith.mulf %10, %11 : vector<2x1xf32>
    %13 = math.sqrt %12 : vector<2x1xf32>
    %cst_4 = arith.constant 9.99999997E-7 : f32
    %14 = vector.broadcast %cst_4 : f32 to vector<2x1xf32>
    %15 = arith.addf %13, %14 : vector<2x1xf32>
    %16 = tpu.reciprocal %15 : vector<2x1xf32> -> vector<2x1xf32>
    %17 = vector.broadcast %16 : vector<2x1xf32> to vector<2x32xf32>
    %18 = arith.mulf %7, %17 : vector<2x32xf32>
    %19 = vector.extract_strided_slice %0 {offsets = [0, 32], sizes = [2, 32], strides = [1, 1]} : vector<2x128xf32> to vector<2x32xf32>
    %cst_5 = arith.constant dense<0.000000e+00> : vector<2xf32>
    %20 = vector.multi_reduction <add>, %19, %cst_5 [1] : vector<2x32xf32> to vector<2xf32>
    %21 = vector.shape_cast %20 : vector<2xf32> to vector<2x1xf32>
    %cst_6 = arith.constant 3.200000e+01 : f32
    %22 = vector.broadcast %cst_6 : f32 to vector<2x1xf32>
    %23 = arith.divf %21, %22 : vector<2x1xf32>
    %24 = vector.broadcast %23 : vector<2x1xf32> to vector<2x32xf32>
    %25 = arith.subf %19, %24 : vector<2x32xf32>
    %26 = arith.mulf %25, %25 : vector<2x32xf32>
    %cst_7 = arith.constant dense<0.000000e+00> : vector<2xf32>
    %27 = vector.multi_reduction <add>, %26, %cst_7 [1] : vector<2x32xf32> to vector<2xf32>
    %28 = vector.shape_cast %27 : vector<2xf32> to vector<2x1xf32>
    %cst_8 = arith.constant 0.0322580636 : f32
    %29 = vector.broadcast %cst_8 : f32 to vector<2x1xf32>
    %30 = arith.mulf %28, %29 : vector<2x1xf32>
    %31 = math.sqrt %30 : vector<2x1xf32>
    %cst_9 = arith.constant 9.99999997E-7 : f32
    %32 = vector.broadcast %cst_9 : f32 to vector<2x1xf32>
    %33 = arith.addf %31, %32 : vector<2x1xf32>
    %34 = tpu.reciprocal %33 : vector<2x1xf32> -> vector<2x1xf32>
    %35 = vector.broadcast %34 : vector<2x1xf32> to vector<2x32xf32>
    %36 = arith.mulf %25, %35 : vector<2x32xf32>
    %37 = vector.extract_strided_slice %0 {offsets = [0, 64], sizes = [2, 32], strides = [1, 1]} : vector<2x128xf32> to vector<2x32xf32>
    %cst_10 = arith.constant dense<0.000000e+00> : vector<2xf32>
    %38 = vector.multi_reduction <add>, %37, %cst_10 [1] : vector<2x32xf32> to vector<2xf32>
    %39 = vector.shape_cast %38 : vector<2xf32> to vector<2x1xf32>
    %cst_11 = arith.constant 3.200000e+01 : f32
    %40 = vector.broadcast %cst_11 : f32 to vector<2x1xf32>
    %41 = arith.divf %39, %40 : vector<2x1xf32>
    %42 = vector.broadcast %41 : vector<2x1xf32> to vector<2x32xf32>
    %43 = arith.subf %37, %42 : vector<2x32xf32>
    %44 = arith.mulf %43, %43 : vector<2x32xf32>
    %cst_12 = arith.constant dense<0.000000e+00> : vector<2xf32>
    %45 = vector.multi_reduction <add>, %44, %cst_12 [1] : vector<2x32xf32> to vector<2xf32>
    %46 = vector.shape_cast %45 : vector<2xf32> to vector<2x1xf32>
    %cst_13 = arith.constant 0.0322580636 : f32
    %47 = vector.broadcast %cst_13 : f32 to vector<2x1xf32>
    %48 = arith.mulf %46, %47 : vector<2x1xf32>
    %49 = math.sqrt %48 : vector<2x1xf32>
    %cst_14 = arith.constant 9.99999997E-7 : f32
    %50 = vector.broadcast %cst_14 : f32 to vector<2x1xf32>
    %51 = arith.addf %49, %50 : vector<2x1xf32>
    %52 = tpu.reciprocal %51 : vector<2x1xf32> -> vector<2x1xf32>
    %53 = vector.broadcast %52 : vector<2x1xf32> to vector<2x32xf32>
    %54 = arith.mulf %43, %53 : vector<2x32xf32>
    %55 = vector.extract_strided_slice %0 {offsets = [0, 96], sizes = [2, 32], strides = [1, 1]} : vector<2x128xf32> to vector<2x32xf32>
    %cst_15 = arith.constant dense<0.000000e+00> : vector<2xf32>
    %56 = vector.multi_reduction <add>, %55, %cst_15 [1] : vector<2x32xf32> to vector<2xf32>
    %57 = vector.shape_cast %56 : vector<2xf32> to vector<2x1xf32>
    %cst_16 = arith.constant 3.200000e+01 : f32
    %58 = vector.broadcast %cst_16 : f32 to vector<2x1xf32>
    %59 = arith.divf %57, %58 : vector<2x1xf32>
    %60 = vector.broadcast %59 : vector<2x1xf32> to vector<2x32xf32>
    %61 = arith.subf %55, %60 : vector<2x32xf32>
    %62 = arith.mulf %61, %61 : vector<2x32xf32>
    %cst_17 = arith.constant dense<0.000000e+00> : vector<2xf32>
    %63 = vector.multi_reduction <add>, %62, %cst_17 [1] : vector<2x32xf32> to vector<2xf32>
    %64 = vector.shape_cast %63 : vector<2xf32> to vector<2x1xf32>
    %cst_18 = arith.constant 0.0322580636 : f32
    %65 = vector.broadcast %cst_18 : f32 to vector<2x1xf32>
    %66 = arith.mulf %64, %65 : vector<2x1xf32>
    %67 = math.sqrt %66 : vector<2x1xf32>
    %cst_19 = arith.constant 9.99999997E-7 : f32
    %68 = vector.broadcast %cst_19 : f32 to vector<2x1xf32>
    %69 = arith.addf %67, %68 : vector<2x1xf32>
    %70 = tpu.reciprocal %69 : vector<2x1xf32> -> vector<2x1xf32>
    %71 = vector.broadcast %70 : vector<2x1xf32> to vector<2x32xf32>
    %72 = arith.mulf %61, %71 : vector<2x32xf32>
    %73 = tpu.concatenate %18, %36, %54, %72 in 1 : vector<2x32xf32>, vector<2x32xf32>, vector<2x32xf32>, vector<2x32xf32> -> vector<2x128xf32>
    %c0_20 = arith.constant 0 : index
    %c0_21 = arith.constant 0 : index
    %74 = vector.load %arg2[%c0_20, %c0_21] : memref<1x128xf32, #tpu.memory_space<vmem>>, vector<1x128xf32>
    %75 = vector.broadcast %74 : vector<1x128xf32> to vector<2x128xf32>
    %76 = arith.addf %73, %75 : vector<2x128xf32>
    %c0_22 = arith.constant 0 : index
    %c0_23 = arith.constant 0 : index
    %77 = vector.load %arg3[%c0_22, %c0_23] : memref<2x128xf32, #tpu.memory_space<vmem>>, vector<2x128xf32>
    tpu.vector_store %arg3[%c0_22, %c0_23], %76 {strides = array<i32>} : memref<2x128xf32, #tpu.memory_space<vmem>>, vector<2x128xf32>,
    return
  }
  func.func @transform_0(%arg0: i32) -> (i32, i32) {
    %c0_i32 = arith.constant 0 : i32
    %c0_i32_0 = arith.constant 0 : i32
    return %arg0, %c0_i32 : i32, i32
  }
  func.func @transform_1(%arg0: i32) -> (i32, i32) {
    %c0_i32 = arith.constant 0 : i32
    %c0_i32_0 = arith.constant 0 : i32
    %c0_i32_1 = arith.constant 0 : i32
    return %c0_i32, %c0_i32_0 : i32, i32
  }
  func.func @transform_2(%arg0: i32) -> (i32, i32) {
    %c0_i32 = arith.constant 0 : i32
    %c0_i32_0 = arith.constant 0 : i32
    return %arg0, %c0_i32 : i32, i32
  }
}

</mosaic_0001>

<bundles_post_ra>
// kernel: tpu_custom_call.1
= control target key start
LH: loop header
LB: loop body
LE: loop exit
PB: predicated region body
PF: predicated region fallthrough
CT: control target
= control target key end

     0   :  { %7 = vsyncpa [#allocation3], 0  ;;  %s282_s0 = inlined_call_operand.hbm [shape: f32[2,128], index: 0, kind: input, shape index: {}]   ;;  %s283_s1 = inlined_call_operand.vmem [shape: f32[1,128], index: 1, kind: input, shape index: {}]   ;;  %s284_s2 = inlined_call_operand.hbm [shape: f32[2,128], index: 2, kind: output, shape index: {}]  }
   0x1   :  { %8 = vsyncpa [#allocation4], 0  ;;  %s225_s9 = smov [#allocation2]  }
   0x2   :  { %s15_s10 = sshll.u32 %s225_s9, 4  ;;  %s16_s10 = int_to_ptr.vmem [resolvable:$true] %s15_s10 }
   0x3   :  { %s189_s11 = scalar_lea.vmem %s16_s10, 32  ;;  %p194_p1 = scmp.lt.s32.totalorder %s16_s10, %s16_s10 }
   0x4   :  { %p190_p0 = scmp.ne.s32.totalorder %s16_s10, %s189_s11  ;;  %p195_p2 = scmp.lt.s32.totalorder %s189_s11, %s189_s11 }
   0x6   :  { %p196_p3 = por %p195_p2, %p194_p1 }
   0x8   :  { %p197_p4 = pnand %p196_p3, %p190_p0 }
   0xa   :  { %200 = shalt.err (!%p197_p4)
}
   0xb   :  { %18 = dma.hbm_to_vmem [thread:$0]  %s282_s0, 32, %s16_s10, [#allocation3]  }
   0xc   :  { %221 = dma.done.wait [#allocation3], 32  }
   0xd   :  { %222 = vsyncadd [#allocation3], 4294967264  ;;  %v24_v0 = vld [vmem:[#allocation2] sm:$0x3]  ;;  %s226_s14 = smov 96   ;;  %s227_s15 = smov 32  }
   0xe   :  { %48 = vrot.lane.b32.xlu0 %v24_v0, %s226_s14  ;;  %102 = vrot.lane.b32.xlu1 %v24_v0, %s227_s15  ;;  %s228_s16 = smov 64   ;;  %vm25_vm0 = vcmask 254976   ;;  %vm129_vm9 = vcmask 261120   ;;  %vm131_vm10 = vcmask 523264   ;;  %vm133_vm11 = vcmask 785408   ;;  %s229_s18 = smov [#allocation5]  }
   0xf   :  { %v26_v3 = vsel %vm25_vm0, %v24_v0, 0.0  ;;  %s150_s19 = sshll.u32 %s229_s18, 4  ;;  %s151_s19 = int_to_ptr.vmem [resolvable:$true] %s150_s19 }
  0x10   :  { %s201_s20 = scalar_lea.vmem %s151_s19, 32  ;;  %p206_p6 = scmp.lt.s32.totalorder %s151_s19, %s151_s19 }
  0x11   :  { %p202_p5 = scmp.ne.s32.totalorder %s151_s19, %s201_s20  ;;  %p207_p7 = scmp.lt.s32.totalorder %s201_s20, %s201_s20 }
  0x12   :  { %75 = vrot.lane.b32.xlu0 %v24_v0, %s228_s16 }
  0x13   :  { %p208_p8 = por %p207_p7, %p206_p6 }
  0x15   :  { %p209_p9 = pnand %p208_p8, %p202_p5 }
  0x80   :  { %v49_v1 = vpop.permute.xlu0 %48  ;;  %v103_v5 = vpop.permute.xlu1 %102 }
  0x81   :  { %v51_v2 = vsel %vm25_vm0, %v49_v1, 0.0  ;;  %v105_v7 = vsel %vm25_vm0, %v103_v5, 0.0 }
  0x82   :  { %52 = vadd.xlane.f32.xlu1 %v51_v2 }
  0x84   :  { %v76_v4 = vpop.permute.xlu0 %75 }
  0x85   :  { %v78_v6 = vsel %vm25_vm0, %v76_v4, 0.0 }
  0x86   :  { %79 = vadd.xlane.f32.xlu0 %v78_v6  ;;  %27 = vadd.xlane.f32.xlu1 %v26_v3 }
  0x8a   :  { %106 = vadd.xlane.f32.xlu0 %v105_v7 }
 0x10b   :  { %v53_v8 = vpop.xlane.xlu1 %52 }
 0x10c   :  { %v54_v9 = vmul.f32 0.03125, %v53_v8  ;;  %v159_v8 = vld [vmem:[%s283_s1] ss:$0 sm:$0xff] }
 0x10e   :  { %v252_v10 = vsub.f32 %v24_v0, %v54_v9 }
 0x10f   :  { %v80_v11 = vpop.xlane.xlu0 %79  ;;  %v28_v20 = vpop.xlane.xlu1 %27 }
 0x110   :  { %v81_v12 = vmul.f32 0.03125, %v80_v11  ;;  %v56_v13 = vmul.f32 %v252_v10, %v252_v10  ;;  %v30_v21 = vmul.f32 0.03125, %v28_v20 }
 0x112   :  { %v256_v14 = vsub.f32 %v24_v0, %v81_v12  ;;  %58 = vrot.lane.b32.xlu0 %v56_v13, %s226_s14  ;;  %v264_v22 = vsub.f32 %v24_v0, %v30_v21 }
 0x113   :  { %v107_v15 = vpop.xlane.xlu0 %106 }
 0x114   :  { %v108_v16 = vmul.f32 0.03125, %v107_v15  ;;  %v83_v17 = vmul.f32 %v256_v14, %v256_v14  ;;  %v32_v23 = vmul.f32 %v264_v22, %v264_v22 }
 0x116   :  { %v260_v18 = vsub.f32 %v24_v0, %v108_v16  ;;  %85 = vrot.lane.b32.xlu1 %v83_v17, %s228_s16  ;;  %v33_v24 = vsel %vm25_vm0, %v32_v23, 0.0 }
 0x118   :  { %v110_v19 = vmul.f32 %v260_v18, %v260_v18 }
 0x11a   :  { %112 = vrot.lane.b32.xlu1 %v110_v19, %s227_s15 }
 0x131   :  { %34 = vadd.xlane.f32.xlu0 %v33_v24 }
 0x184   :  { %v59_v25 = vpop.permute.xlu0 %58 }
 0x185   :  { %v61_v26 = vsel %vm25_vm0, %v59_v25, 0.0 }
 0x186   :  { %62 = vadd.xlane.f32.xlu1 %v61_v26 }
 0x188   :  { %v86_v27 = vpop.permute.xlu1 %85 }
 0x189   :  { %v88_v28 = vsel %vm25_vm0, %v86_v27, 0.0 }
 0x18a   :  { %89 = vadd.xlane.f32.xlu0 %v88_v28 }
 0x18c   :  { %v113_v29 = vpop.permute.xlu1 %112 }
 0x18d   :  { %v115_v30 = vsel %vm25_vm0, %v113_v29, 0.0 }
 0x18e   :  { %116 = vadd.xlane.f32.xlu0 %v115_v30 }
 0x1ba   :  { %v35_v31 = vpop.xlane.xlu0 %34 }
 0x1bb   :  { %v36_v32 = vmul.f32 0.032258064, %v35_v31 }
 0x1bd   :  { %165 = vrsqrt.f32 %v36_v32  ;;  %vm39_vm1 = vcmp.eq.f32.partialorder %v36_v32, inf  ;;  %v42_v41 = vand.u32 2147483648, %v36_v32  ;;  %vm41_vm2 = vcmp.eq.f32.partialorder %v36_v32, 0.0 }
 0x1ca   :  { %v166_v38 = vpop.eup %165 }
 0x1cb   :  { %v38_v40 = vmul.f32 %v166_v38, %v36_v32 }
 0x1cd   :  { %v40_v43 = vsel %vm39_vm1, %v36_v32, %v38_v40 }
 0x1ce   :  { %v43_v46 = vsel %vm41_vm2, %v42_v41, %v40_v43 }
 0x1cf   :  { %v44_v52 = vadd.f32 1e-06, %v43_v46 }
 0x20f   :  { %v63_v33 = vpop.xlane.xlu1 %62 }
 0x210   :  { %v64_v34 = vmul.f32 0.032258064, %v63_v33 }
 0x212   :  { %167 = vrsqrt.f32 %v64_v34  ;;  %vm67_vm3 = vcmp.eq.f32.partialorder %v64_v34, inf  ;;  %v70_v45 = vand.u32 2147483648, %v64_v34  ;;  %vm69_vm4 = vcmp.eq.f32.partialorder %v64_v34, 0.0 }
 0x213   :  { %v90_v35 = vpop.xlane.xlu0 %89 }
 0x214   :  { %v91_v36 = vmul.f32 0.032258064, %v90_v35 }
 0x216   :  { %169 = vrsqrt.f32 %v91_v36  ;;  %vm94_vm5 = vcmp.eq.f32.partialorder %v91_v36, inf  ;;  %v97_v53 = vand.u32 2147483648, %v91_v36  ;;  %vm96_vm6 = vcmp.eq.f32.partialorder %v91_v36, 0.0 }
 0x217   :  { %v117_v37 = vpop.xlane.xlu0 %116 }
 0x218   :  { %v118_v39 = vmul.f32 0.032258064, %v117_v37 }
 0x21a   :  { %171 = vrsqrt.f32 %v118_v39  ;;  %vm121_vm7 = vcmp.eq.f32.partialorder %v118_v39, inf  ;;  %v124_v59 = vand.u32 2147483648, %v118_v39  ;;  %vm123_vm8 = vcmp.eq.f32.partialorder %v118_v39, 0.0 }
 0x21f   :  { %v168_v42 = vpop.eup %167 }
 0x220   :  { %v66_v44 = vmul.f32 %v168_v42, %v64_v34 }
 0x222   :  { %v68_v47 = vsel %vm67_vm3, %v64_v34, %v66_v44 }
 0x223   :  { %v170_v48 = vpop.eup %169  ;;  %v71_v49 = vsel %vm69_vm4, %v70_v45, %v68_v47 }
 0x224   :  { %v72_v50 = vadd.f32 1e-06, %v71_v49  ;;  %v93_v51 = vmul.f32 %v170_v48, %v91_v36 }
 0x226   :  { %v95_v54 = vsel %vm94_vm5, %v91_v36, %v93_v51  ;;  %173 = vrcp.f32 %v72_v50 }
 0x227   :  { %v172_v55 = vpop.eup %171  ;;  %v98_v56 = vsel %vm96_vm6, %v97_v53, %v95_v54  ;;  %175 = vrcp.f32 %v44_v52 }
 0x228   :  { %v99_v57 = vadd.f32 1e-06, %v98_v56  ;;  %v120_v58 = vmul.f32 %v172_v55, %v118_v39 }
 0x22a   :  { %177 = vrcp.f32 %v99_v57  ;;  %v122_v60 = vsel %vm121_vm7, %v118_v39, %v120_v58 }
 0x22b   :  { %v125_v61 = vsel %vm123_vm8, %v124_v59, %v122_v60 }
 0x22c   :  { %v126_v62 = vadd.f32 1e-06, %v125_v61 }
 0x22e   :  { %179 = vrcp.f32 %v126_v62 }
 0x233   :  { %v174_v63 = vpop.eup %173 }
 0x234   :  { %v176_v0 = vpop.eup %175  ;;  %v74_v2 = vmul.f32 %v174_v63, %v252_v10 }
 0x235   :  { %v46_v4 = vmul.f32 %v176_v0, %v264_v22 }
 0x237   :  { %v178_v1 = vpop.eup %177  ;;  %v130_v7 = vsel %vm129_vm9, %v46_v4, %v74_v2 }
 0x238   :  { %v101_v3 = vmul.f32 %v178_v1, %v256_v14 }
 0x23a   :  { %v132_v9 = vsel %vm131_vm10, %v130_v7, %v101_v3 }
 0x23b   :  { %v180_v5 = vpop.eup %179 }
 0x23c   :  { %v128_v6 = vmul.f32 %v180_v5, %v260_v18 }
 0x23e   :  { %v134_v11 = vsel %vm133_vm11, %v132_v9, %v128_v6 }
 0x23f   :  { %v142_v10 = vadd.f32 %v159_v8, %v134_v11 }
 0x241   :  { %143 = vst [vmem:[#allocation5] sm:$0x3] %v142_v10 }
 0x242   :  { %212 = shalt.err (!%p209_p9)
}
 0x243   :  { %153 = dma.vmem_to_hbm [thread:$0]  %s151_s19, 32, %s284_s2, [#allocation4]  }
 0x244   :  { %223 = dma.done.wait [#allocation4], 32  }
 0x245   :  { %224 = vsyncadd [#allocation4], 4294967264 }
 0x246   :  { %157 = vsyncpa [#allocation3], 1 }
 0x247   :  { %158 = vsyncpa [#allocation4], 1 }

</bundles_post_ra>
